<compile_context>
chip_gen: v5e
topology: v5e:2x2
jax: 0.10.0
libtpu: 0.0.40
codegen_flags: <defaults>
</compile_context>

<pallas_src>
import functools

import jax
import jax.numpy as jnp
from jax.experimental import pallas as pl
from jax.experimental.pallas import tpu as pltpu  # noqa: F401  (TPU backend)


A_PAD = 128   # lane-padded per-head action dimension
B_PAD = 8     # sublane-padded batch dimension (unmasked stores)


# -----------------------------------------------------------------------------
# Pallas kernel: single invocation, both heads fused along the lane dimension
# -----------------------------------------------------------------------------
def _heads_kernel(
    x_ref,       # (B*N, D)        bf16  object-centric state features
    m_ref,       # (B_PAD, B*N)    bf16  normalized block-diag pooling matrix
    amean_ref,   # (B_PAD, A_PAD)  bf16  mean one-hot action history
    w1_ref, b1_ref,    # (D, 2H) bf16, (1, 2H) f32
    w2_ref, b2_ref,    # (2H, 2H) bf16 block-diag, (1, 2H) f32
    wa_ref, ba_ref,    # (A_PAD, 2H) bf16, (1, 2H) f32
    wo_ref, bo_ref,    # (4H, 2*A_PAD) bf16 block-structured, (1, 2*A_PAD) f32
    prob_ref,          # (2, B_PAD, A_PAD) f32   softmax action probabilities
    idx_ref,           # (2, B_PAD, 1)     int32 per-head argmax
    *,
    n_actions: int,
):
    f32, bf16 = jnp.float32, jnp.bfloat16

    # ---- per-object 2-layer MLP encoder, both heads lane-stacked (256 wide) --
    h1 = jnp.dot(x_ref[...], w1_ref[...], preferred_element_type=f32) + b1_ref[...]
    h1 = jnp.maximum(h1, 0.0)                                        # f32 VPU
    h2 = (jnp.dot(h1.astype(bf16), w2_ref[...], preferred_element_type=f32)
          + b2_ref[...])                                             # (BN, 2H)

    # ---- filt-mask weighted mean pooling over objects (precomputed matrix) --
    pooled = jnp.dot(m_ref[...], h2.astype(bf16),
                     preferred_element_type=f32)                     # (B_PAD, 2H)

    # ---- action-history mean embedding (mean precomputed in wrapper) --------
    ha = (jnp.dot(amean_ref[...], wa_ref[...], preferred_element_type=f32)
          + ba_ref[...])                                             # (B_PAD, 2H)

    # ---- merged output head: one K=4H dot on [pooled | ha] ------------------
    feat = jnp.concatenate([pooled, ha], axis=-1).astype(bf16)       # (B_PAD, 4H)
    logits = (jnp.dot(feat, wo_ref[...], preferred_element_type=f32)
              + bo_ref[...])                                         # (B_PAD, 2*A_PAD)

    # mask lane padding so softmax / argmax only cover the real actions
    lane = jax.lax.broadcasted_iota(jnp.int32, logits.shape, 1)
    logits = jnp.where((lane % A_PAD) < n_actions, logits, -1e30)

    # per-head softmax + argmax (exact division; B_PAD rows -> negligible cost)
    for h in range(2):
        l = logits[:, h * A_PAD:(h + 1) * A_PAD]                     # (B_PAD, A_PAD)
        mx = jnp.max(l, axis=-1, keepdims=True)
        e = jnp.exp(l - mx)
        prob_ref[h] = e / jnp.sum(e, axis=-1, keepdims=True)
        lane_h = jax.lax.broadcasted_iota(jnp.int32, l.shape, 1)
        idx_ref[h] = jnp.min(jnp.where(l >= mx, lane_h, A_PAD),
                             axis=-1, keepdims=True)


# -----------------------------------------------------------------------------
# Wrapper helpers
# -----------------------------------------------------------------------------
def _preprocess(state_feats, filt_mask, action_hist):
    """Builds the kernel inputs; all ops fuse into one small XLA fusion."""
    B, N, D = state_feats.shape
    A = action_hist.shape[2]
    BN = B * N

    x2 = state_feats.reshape(BN, D).astype(jnp.bfloat16)

    # normalized block-diagonal pooling matrix: m[b, b*N + n] = mask[b,n]/count_b
    counts = jnp.sum(filt_mask, axis=1, keepdims=True)               # (B, 1)
    mnorm = filt_mask / jnp.maximum(counts, 1.0)                     # exact divide
    eye_b = jnp.eye(B, dtype=mnorm.dtype)
    m_bd = (eye_b[:, :, None] * mnorm[None, :, :]).reshape(B, BN)
    m_bd = jnp.pad(m_bd, ((0, B_PAD - B), (0, 0))).astype(jnp.bfloat16)

    # action-history mean, sublane/lane padded
    a_mean = jnp.mean(action_hist.astype(jnp.float32), axis=1)       # (B, A)
    a_mean = jnp.pad(a_mean, ((0, B_PAD - B), (0, A_PAD - A))).astype(jnp.bfloat16)
    return x2, m_bd, a_mean


@functools.partial(jax.jit, static_argnames=("n_actions",))
def abil_dt_heads_forward(state_feats, filt_mask, action_hist, params, n_actions):
    """Returns (probs, argmax):
         probs:  (2, B_PAD, A_PAD) f32   [0]=pick head, [1]=place head
         argmax: (2, B_PAD, 1)     int32
       Callers slice [:B, :n_actions] lazily."""
    B = state_feats.shape[0]
    A = action_hist.shape[2]
    assert B <= B_PAD and A <= A_PAD and n_actions <= A_PAD

    x2, m_bd, a_mean = _preprocess(state_feats, filt_mask, action_hist)

    kernel = functools.partial(_heads_kernel, n_actions=n_actions)
    # Single invocation, no grid: every array is a full-extent VMEM block
    # (total resident footprint ~0.6 MB).
    probs, idx = pl.pallas_call(
        kernel,
        out_shape=(jax.ShapeDtypeStruct((2, B_PAD, A_PAD), jnp.float32),
                   jax.ShapeDtypeStruct((2, B_PAD, 1), jnp.int32)),
    )(x2, m_bd, a_mean,
      params["w1"], params["b1"], params["w2"], params["b2"],
      params["wa"], params["ba"], params["wo"], params["bo"])
    return probs, idx


# -----------------------------------------------------------------------------
# Parameter init: both heads merged into MXU-friendly 256-lane-wide matrices
# -----------------------------------------------------------------------------
def init_merged_params(key, d_state, hidden, n_actions):
    H = hidden
    ks = jax.random.split(key, 8)

    def w(k, shape, fan_in):
        return jax.random.normal(k, shape, jnp.float32) / jnp.sqrt(jnp.float32(fan_in))

    # per-head weights
    w1_p, w1_q = w(ks[0], (d_state, H), d_state), w(ks[1], (d_state, H), d_state)
    w2_p, w2_q = w(ks[2], (H, H), H),             w(ks[3], (H, H), H)
    wa_p, wa_q = w(ks[4], (A_PAD, H), n_actions), w(ks[5], (A_PAD, H), n_actions)
    # per-head output weight on [pooled ; ha] -> (2H, A_PAD)
    wo_p, wo_q = w(ks[6], (2 * H, A_PAD), 2 * H), w(ks[7], (2 * H, A_PAD), 2 * H)

    z_hh = jnp.zeros((H, H), jnp.float32)
    z_ha = jnp.zeros((H, A_PAD), jnp.float32)

    # lane-stacked / block-structured merged layout
    w1 = jnp.concatenate([w1_p, w1_q], axis=1)                     # (D, 2H)
    w2 = jnp.block([[w2_p, z_hh], [z_hh, w2_q]])                   # (2H, 2H) block-diag
    wa = jnp.concatenate([wa_p, wa_q], axis=1)                     # (A_PAD, 2H)
    # feat lanes: [pooled_p | pooled_q | ha_p | ha_q]; logits lanes: [pick | place]
    wo = jnp.block([[wo_p[:H], z_ha],
                    [z_ha, wo_q[:H]],
                    [wo_p[H:], z_ha],
                    [z_ha, wo_q[H:]]])                             # (4H, 2*A_PAD)

    return {
        "w1": w1.astype(jnp.bfloat16), "b1": jnp.zeros((1, 2 * H), jnp.float32),
        "w2": w2.astype(jnp.bfloat16), "b2": jnp.zeros((1, 2 * H), jnp.float32),
        "wa": wa.astype(jnp.bfloat16), "ba": jnp.zeros((1, 2 * H), jnp.float32),
        "wo": wo.astype(jnp.bfloat16), "bo": jnp.zeros((1, 2 * A_PAD), jnp.float32),
    }


# -----------------------------------------------------------------------------
# Pure-JAX reference of the fused head math (same bf16 operands) for validation
# -----------------------------------------------------------------------------
def reference_heads(x2, m_bd, a_mean, params, n_actions):
    f32, bf16 = jnp.float32, jnp.bfloat16
    h1 = jnp.maximum(jnp.dot(x2, params["w1"], preferred_element_type=f32)
                     + params["b1"], 0.0)
    h2 = jnp.dot(h1.astype(bf16), params["w2"], preferred_element_type=f32) + params["b2"]
    pooled = jnp.dot(m_bd, h2.astype(bf16), preferred_element_type=f32)
    ha = jnp.dot(a_mean, params["wa"], preferred_element_type=f32) + params["ba"]
    feat = jnp.concatenate([pooled, ha], axis=-1).astype(bf16)
    logits = jnp.dot(feat, params["wo"], preferred_element_type=f32) + params["bo"]
    lane = jax.lax.broadcasted_iota(jnp.int32, logits.shape, 1)
    logits = jnp.where((lane % A_PAD) < n_actions, logits, -1e30)
    out = []
    for h in range(2):
        out.append(jax.nn.softmax(logits[:, h * A_PAD:(h + 1) * A_PAD], axis=-1))
    return jnp.stack(out, axis=0)                                   # (2, B_PAD, A_PAD)


# -----------------------------------------------------------------------------
# Model mirroring ABIL_DTModel: two policy heads (pick / place), forward() -> 0
# -----------------------------------------------------------------------------
class ABIL_DTModelJAX:
    def __init__(self, d_state, hidden, n_actions, key):
        self.n_actions = n_actions
        self.params = init_merged_params(key, d_state, hidden, n_actions)
        self.state = 1

    def forward(self, states, goal_tensors, actions, filt_obj_tensors):
        # Exact semantics of the PyTorch module's forward().
        return 0

    def forward_heads(self, state_feats, action_hist, filt_mask):
        return abil_dt_heads_forward(state_feats, filt_mask, action_hist,
                                     self.params, n_actions=self.n_actions)

    def make_action(self, state_feats, action_hist, filt_mask, hands_free):
        # One fused pallas_call computes both heads + their argmax; the head
        # selection mirrors the (host-side) goal_test branch of the original.
        probs, idx = self.forward_heads(state_feats, action_hist, filt_mask)
        head = 0 if hands_free else 1            # 0 = pick_abs, 1 = place_abs
        B = state_feats.shape[0]
        return idx[head, :B, 0], probs[head, :B, :self.n_actions]


# -----------------------------------------------------------------------------
# Main
# -----------------------------------------------------------------------------
if __name__ == "__main__":
    B, N_OBJ, D_STATE, HIDDEN, N_ACTIONS, T_HIST = 2, 8, 32, 128, 4, 2

    key = jax.random.PRNGKey(0)
    k_model, k_state, k_mask, k_act = jax.random.split(key, 4)

    model = ABIL_DTModelJAX(D_STATE, HIDDEN, N_ACTIONS, k_model)

    state_feats = jax.random.normal(k_state, (B, N_OBJ, D_STATE), jnp.float32)
    filt_mask = (jax.random.uniform(k_mask, (B, N_OBJ)) > 0.5).astype(jnp.float32)
    filt_mask = filt_mask.at[:, 0].set(1.0)      # at least one selected object
    act_idx = jax.random.randint(k_act, (B, T_HIST), 0, N_ACTIONS)
    action_hist = jax.nn.one_hot(act_idx, N_ACTIONS, dtype=jnp.float32)

    # Top-level forward (exact PyTorch semantics)
    assert model.forward(state_feats, None, action_hist, filt_mask) == 0

    # Policy-head hot path through the single fused Pallas kernel
    a_pick, p_pick = model.make_action(state_feats, action_hist, filt_mask,
                                       hands_free=True)
    a_place, p_place = model.make_action(state_feats, action_hist, filt_mask,
                                         hands_free=False)
    p_pick = jax.block_until_ready(p_pick)
    p_place = jax.block_until_ready(p_place)
    a_pick = jax.block_until_ready(a_pick)
    a_place = jax.block_until_ready(a_place)

    assert p_pick.shape == (B, N_ACTIONS)
    assert p_place.shape == (B, N_ACTIONS)
    assert bool(jnp.all(jnp.isfinite(p_pick)))
    assert bool(jnp.all(jnp.isfinite(p_place)))
    # exact-division softmax -> tight tolerance
    assert bool(jnp.allclose(jnp.sum(p_pick, axis=-1), 1.0, atol=1e-5))
    assert bool(jnp.allclose(jnp.sum(p_place, axis=-1), 1.0, atol=1e-5))
    # in-kernel argmax matches host argmax of the returned probabilities
    assert bool(jnp.array_equal(a_pick, jnp.argmax(p_pick, axis=-1)))
    assert bool(jnp.array_equal(a_place, jnp.argmax(p_place, axis=-1)))

    # Validate kernel numerics against a pure-JAX reference of the same math
    x2, m_bd, a_mean = _preprocess(state_feats, filt_mask, action_hist)
    ref = reference_heads(x2, m_bd, a_mean, model.params, N_ACTIONS)
    probs_full, _ = model.forward_heads(state_feats, action_hist, filt_mask)
    probs_full = jax.block_until_ready(probs_full)
    assert bool(jnp.allclose(probs_full[:, :B, :N_ACTIONS],
                             ref[:, :B, :N_ACTIONS], atol=5e-3))

    print("KERNEL_OK")
</pallas_src>

<mosaic_0001>
module attributes {stable_mosaic.version = 11 : i64} {
  func.func @_heads_kernel(%arg0: memref<16x32xbf16, #tpu.memory_space<vmem>>, %arg1: memref<8x16xbf16, #tpu.memory_space<vmem>>, %arg2: memref<8x128xbf16, #tpu.memory_space<vmem>>, %arg3: memref<32x256xbf16, #tpu.memory_space<vmem>>, %arg4: memref<1x256xf32, #tpu.memory_space<vmem>>, %arg5: memref<256x256xbf16, #tpu.memory_space<vmem>>, %arg6: memref<1x256xf32, #tpu.memory_space<vmem>>, %arg7: memref<128x256xbf16, #tpu.memory_space<vmem>>, %arg8: memref<1x256xf32, #tpu.memory_space<vmem>>, %arg9: memref<512x256xbf16, #tpu.memory_space<vmem>>, %arg10: memref<1x256xf32, #tpu.memory_space<vmem>>, %arg11: memref<2x8x128xf32, #tpu.memory_space<vmem>>, %arg12: memref<2x8x1xi32, #tpu.memory_space<vmem>>) attributes {dimension_semantics = [], scalar_prefetch = 0 : i64, scratch_operands = 0 : i64, tpu.core_type = #tpu.core_type<tc>} {
    %c0 = arith.constant 0 : index
    %c0_0 = arith.constant 0 : index
    %0 = vector.load %arg0[%c0, %c0_0] : memref<16x32xbf16, #tpu.memory_space<vmem>>, vector<16x32xbf16>
    %c0_1 = arith.constant 0 : index
    %c0_2 = arith.constant 0 : index
    %1 = vector.load %arg3[%c0_1, %c0_2] : memref<32x256xbf16, #tpu.memory_space<vmem>>, vector<32x256xbf16>
    %cst = arith.constant dense<0.000000e+00> : vector<16x256xf32>
    %2 = tpu.matmul %0, %1, %cst {dimension_numbers = #tpu.dot_dimension_numbers<[1], [0], [0], [1], [0, 0, 1, 1], [], []>} : vector<16x32xbf16>, vector<32x256xbf16>, vector<16x256xf32> -> vector<16x256xf32>
    %c0_3 = arith.constant 0 : index
    %c0_4 = arith.constant 0 : index
    %3 = vector.load %arg4[%c0_3, %c0_4] : memref<1x256xf32, #tpu.memory_space<vmem>>, vector<1x256xf32>
    %4 = vector.broadcast %3 : vector<1x256xf32> to vector<16x256xf32>
    %5 = arith.addf %2, %4 : vector<16x256xf32>
    %cst_5 = arith.constant 0.000000e+00 : f32
    %6 = vector.broadcast %cst_5 : f32 to vector<16x256xf32>
    %7 = arith.maximumf %5, %6 : vector<16x256xf32>
    %8 = arith.truncf %7 : vector<16x256xf32> to vector<16x256xbf16>
    %c0_6 = arith.constant 0 : index
    %c0_7 = arith.constant 0 : index
    %9 = vector.load %arg5[%c0_6, %c0_7] : memref<256x256xbf16, #tpu.memory_space<vmem>>, vector<256x256xbf16>
    %cst_8 = arith.constant dense<0.000000e+00> : vector<16x256xf32>
    %10 = tpu.matmul %8, %9, %cst_8 {dimension_numbers = #tpu.dot_dimension_numbers<[1], [0], [0], [1], [0, 0, 1, 1], [], []>} : vector<16x256xbf16>, vector<256x256xbf16>, vector<16x256xf32> -> vector<16x256xf32>
    %c0_9 = arith.constant 0 : index
    %c0_10 = arith.constant 0 : index
    %11 = vector.load %arg6[%c0_9, %c0_10] : memref<1x256xf32, #tpu.memory_space<vmem>>, vector<1x256xf32>
    %12 = vector.broadcast %11 : vector<1x256xf32> to vector<16x256xf32>
    %13 = arith.addf %10, %12 : vector<16x256xf32>
    %c0_11 = arith.constant 0 : index
    %c0_12 = arith.constant 0 : index
    %14 = vector.load %arg1[%c0_11, %c0_12] : memref<8x16xbf16, #tpu.memory_space<vmem>>, vector<8x16xbf16>
    %15 = arith.truncf %13 : vector<16x256xf32> to vector<16x256xbf16>
    %cst_13 = arith.constant dense<0.000000e+00> : vector<8x256xf32>
    %16 = tpu.matmul %14, %15, %cst_13 {dimension_numbers = #tpu.dot_dimension_numbers<[1], [0], [0], [1], [0, 0, 1, 1], [], []>} : vector<8x16xbf16>, vector<16x256xbf16>, vector<8x256xf32> -> vector<8x256xf32>
    %c0_14 = arith.constant 0 : index
    %c0_15 = arith.constant 0 : index
    %17 = vector.load %arg2[%c0_14, %c0_15] : memref<8x128xbf16, #tpu.memory_space<vmem>>, vector<8x128xbf16>
    %c0_16 = arith.constant 0 : index
    %c0_17 = arith.constant 0 : index
    %18 = vector.load %arg7[%c0_16, %c0_17] : memref<128x256xbf16, #tpu.memory_space<vmem>>, vector<128x256xbf16>
    %cst_18 = arith.constant dense<0.000000e+00> : vector<8x256xf32>
    %19 = tpu.matmul %17, %18, %cst_18 {dimension_numbers = #tpu.dot_dimension_numbers<[1], [0], [0], [1], [0, 0, 1, 1], [], []>} : vector<8x128xbf16>, vector<128x256xbf16>, vector<8x256xf32> -> vector<8x256xf32>
    %c0_19 = arith.constant 0 : index
    %c0_20 = arith.constant 0 : index
    %20 = vector.load %arg8[%c0_19, %c0_20] : memref<1x256xf32, #tpu.memory_space<vmem>>, vector<1x256xf32>
    %21 = vector.broadcast %20 : vector<1x256xf32> to vector<8x256xf32>
    %22 = arith.addf %19, %21 : vector<8x256xf32>
    %23 = tpu.concatenate %16, %22 in 1 : vector<8x256xf32>, vector<8x256xf32> -> vector<8x512xf32>
    %24 = arith.truncf %23 : vector<8x512xf32> to vector<8x512xbf16>
    %c0_21 = arith.constant 0 : index
    %c0_22 = arith.constant 0 : index
    %25 = vector.load %arg9[%c0_21, %c0_22] : memref<512x256xbf16, #tpu.memory_space<vmem>>, vector<512x256xbf16>
    %cst_23 = arith.constant dense<0.000000e+00> : vector<8x256xf32>
    %26 = tpu.matmul %24, %25, %cst_23 {dimension_numbers = #tpu.dot_dimension_numbers<[1], [0], [0], [1], [0, 0, 1, 1], [], []>} : vector<8x512xbf16>, vector<512x256xbf16>, vector<8x256xf32> -> vector<8x256xf32>
    %c0_24 = arith.constant 0 : index
    %c0_25 = arith.constant 0 : index
    %27 = vector.load %arg10[%c0_24, %c0_25] : memref<1x256xf32, #tpu.memory_space<vmem>>, vector<1x256xf32>
    %28 = vector.broadcast %27 : vector<1x256xf32> to vector<8x256xf32>
    %29 = arith.addf %26, %28 : vector<8x256xf32>
    %30 = tpu.iota {dimensions = array<i32: 1>} : vector<8x256xi32>
    %c128_i32 = arith.constant 128 : i32
    %c0_i32 = arith.constant 0 : i32
    %31 = arith.cmpi eq, %c128_i32, %c0_i32 : i32
    %c1_i32 = arith.constant 1 : i32
    %32 = arith.select %31, %c1_i32, %c128_i32 : i32
    %33 = vector.broadcast %32 : i32 to vector<8x256xi32>
    %34 = arith.remsi %30, %33 : vector<8x256xi32>
    %c0_i32_26 = arith.constant 0 : i32
    %35 = vector.broadcast %c0_i32_26 : i32 to vector<8x256xi32>
    %36 = arith.cmpi ne, %34, %35 : vector<8x256xi32>
    %c0_i32_27 = arith.constant 0 : i32
    %37 = vector.broadcast %c0_i32_27 : i32 to vector<8x256xi32>
    %38 = arith.cmpi slt, %34, %37 : vector<8x256xi32>
    %c0_i32_28 = arith.constant 0 : i32
    %39 = arith.cmpi slt, %32, %c0_i32_28 : i32
    %40 = vector.broadcast %39 : i1 to vector<8x256xi1>
    %41 = vector.broadcast %40 : vector<8x256xi1> to vector<8x256xi1>
    %42 = arith.xori %38, %41 : vector<8x256xi1>
    %43 = arith.andi %42, %36 : vector<8x256xi1>
    %44 = vector.broadcast %32 : i32 to vector<8x256xi32>
    %45 = arith.addi %34, %44 : vector<8x256xi32>
    %46 = arith.select %43, %45, %34 : vector<8x256xi1>, vector<8x256xi32>
    %c4_i32 = arith.constant 4 : i32
    %47 = vector.broadcast %c4_i32 : i32 to vector<8x256xi32>
    %48 = arith.cmpi slt, %46, %47 : vector<8x256xi32>
    %cst_29 = arith.constant -1.000000e+30 : f32
    %49 = vector.broadcast %cst_29 : f32 to vector<8x256xf32>
    %50 = arith.select %48, %29, %49 : vector<8x256xi1>, vector<8x256xf32>
    %51 = vector.extract_strided_slice %50 {offsets = [0, 0], sizes = [8, 128], strides = [1, 1]} : vector<8x256xf32> to vector<8x128xf32>
    %cst_30 = arith.constant dense<0xFF800000> : vector<8xf32>
    %52 = vector.multi_reduction <maximumf>, %51, %cst_30 [1] : vector<8x128xf32> to vector<8xf32>
    %53 = vector.shape_cast %52 : vector<8xf32> to vector<8x1xf32>
    %54 = vector.broadcast %53 : vector<8x1xf32> to vector<8x128xf32>
    %55 = arith.subf %51, %54 : vector<8x128xf32>
    %56 = math.exp %55 : vector<8x128xf32>
    %cst_31 = arith.constant dense<0.000000e+00> : vector<8xf32>
    %57 = vector.multi_reduction <add>, %56, %cst_31 [1] : vector<8x128xf32> to vector<8xf32>
    %58 = vector.shape_cast %57 : vector<8xf32> to vector<8x1xf32>
    %59 = vector.broadcast %58 : vector<8x1xf32> to vector<8x128xf32>
    %60 = arith.divf %56, %59 : vector<8x128xf32>
    %c0_32 = arith.constant 0 : index
    %c0_33 = arith.constant 0 : index
    %c0_34 = arith.constant 0 : index
    %61 = vector.load %arg11[%c0_32, %c0_33, %c0_34] : memref<2x8x128xf32, #tpu.memory_space<vmem>>, vector<1x8x128xf32>
    %62 = vector.shape_cast %61 : vector<1x8x128xf32> to vector<8x128xf32>
    %63 = vector.shape_cast %60 : vector<8x128xf32> to vector<1x8x128xf32>
    tpu.vector_store %arg11[%c0_32, %c0_33, %c0_34], %63 {strides = array<i32>} : memref<2x8x128xf32, #tpu.memory_space<vmem>>, vector<1x8x128xf32>,
    %64 = tpu.iota {dimensions = array<i32: 1>} : vector<8x128xi32>
    %65 = vector.broadcast %53 : vector<8x1xf32> to vector<8x128xf32>
    %66 = arith.cmpf oge, %51, %65 : vector<8x128xf32>
    %c128_i32_35 = arith.constant 128 : i32
    %67 = vector.broadcast %c128_i32_35 : i32 to vector<8x128xi32>
    %68 = arith.select %66, %64, %67 : vector<8x128xi1>, vector<8x128xi32>
    %cst_36 = arith.constant dense<2147483647> : vector<8xi32>
    %69 = vector.multi_reduction <minsi>, %68, %cst_36 [1] : vector<8x128xi32> to vector<8xi32>
    %70 = vector.shape_cast %69 : vector<8xi32> to vector<8x1xi32>
    %c0_37 = arith.constant 0 : index
    %c0_38 = arith.constant 0 : index
    %c0_39 = arith.constant 0 : index
    %71 = vector.load %arg12[%c0_37, %c0_38, %c0_39] : memref<2x8x1xi32, #tpu.memory_space<vmem>>, vector<1x8x1xi32>
    %72 = vector.shape_cast %71 : vector<1x8x1xi32> to vector<8x1xi32>
    %73 = vector.shape_cast %70 : vector<8x1xi32> to vector<1x8x1xi32>
    tpu.vector_store %arg12[%c0_37, %c0_38, %c0_39], %73 {strides = array<i32>} : memref<2x8x1xi32, #tpu.memory_space<vmem>>, vector<1x8x1xi32>,
    %74 = vector.extract_strided_slice %50 {offsets = [0, 128], sizes = [8, 128], strides = [1, 1]} : vector<8x256xf32> to vector<8x128xf32>
    %cst_40 = arith.constant dense<0xFF800000> : vector<8xf32>
    %75 = vector.multi_reduction <maximumf>, %74, %cst_40 [1] : vector<8x128xf32> to vector<8xf32>
    %76 = vector.shape_cast %75 : vector<8xf32> to vector<8x1xf32>
    %77 = vector.broadcast %76 : vector<8x1xf32> to vector<8x128xf32>
    %78 = arith.subf %74, %77 : vector<8x128xf32>
    %79 = math.exp %78 : vector<8x128xf32>
    %cst_41 = arith.constant dense<0.000000e+00> : vector<8xf32>
    %80 = vector.multi_reduction <add>, %79, %cst_41 [1] : vector<8x128xf32> to vector<8xf32>
    %81 = vector.shape_cast %80 : vector<8xf32> to vector<8x1xf32>
    %82 = vector.broadcast %81 : vector<8x1xf32> to vector<8x128xf32>
    %83 = arith.divf %79, %82 : vector<8x128xf32>
    %c1 = arith.constant 1 : index
    %c0_42 = arith.constant 0 : index
    %c0_43 = arith.constant 0 : index
    %84 = vector.load %arg11[%c1, %c0_42, %c0_43] : memref<2x8x128xf32, #tpu.memory_space<vmem>>, vector<1x8x128xf32>
    %85 = vector.shape_cast %84 : vector<1x8x128xf32> to vector<8x128xf32>
    %86 = vector.shape_cast %83 : vector<8x128xf32> to vector<1x8x128xf32>
    tpu.vector_store %arg11[%c1, %c0_42, %c0_43], %86 {strides = array<i32>} : memref<2x8x128xf32, #tpu.memory_space<vmem>>, vector<1x8x128xf32>,
    %87 = tpu.iota {dimensions = array<i32: 1>} : vector<8x128xi32>
    %88 = vector.broadcast %76 : vector<8x1xf32> to vector<8x128xf32>
    %89 = arith.cmpf oge, %74, %88 : vector<8x128xf32>
    %c128_i32_44 = arith.constant 128 : i32
    %90 = vector.broadcast %c128_i32_44 : i32 to vector<8x128xi32>
    %91 = arith.select %89, %87, %90 : vector<8x128xi1>, vector<8x128xi32>
    %cst_45 = arith.constant dense<2147483647> : vector<8xi32>
    %92 = vector.multi_reduction <minsi>, %91, %cst_45 [1] : vector<8x128xi32> to vector<8xi32>
    %93 = vector.shape_cast %92 : vector<8xi32> to vector<8x1xi32>
    %c1_46 = arith.constant 1 : index
    %c0_47 = arith.constant 0 : index
    %c0_48 = arith.constant 0 : index
    %94 = vector.load %arg12[%c1_46, %c0_47, %c0_48] : memref<2x8x1xi32, #tpu.memory_space<vmem>>, vector<1x8x1xi32>
    %95 = vector.shape_cast %94 : vector<1x8x1xi32> to vector<8x1xi32>
    %96 = vector.shape_cast %93 : vector<8x1xi32> to vector<1x8x1xi32>
    tpu.vector_store %arg12[%c1_46, %c0_47, %c0_48], %96 {strides = array<i32>} : memref<2x8x1xi32, #tpu.memory_space<vmem>>, vector<1x8x1xi32>,
    return
  }
}

</mosaic_0001>

<bundles_post_ra>
// kernel: abil_dt_heads_forward.1
= control target key start
LH: loop header
LB: loop body
LE: loop exit
PB: predicated region body
PF: predicated region fallthrough
CT: control target
= control target key end

     0   :  { %18 = vsyncpa [#allocation3], 0  ;;  %s2080_s0 = inlined_call_operand.vmem [shape: bf16[16,32], index: 0, kind: input, shape index: {}]   ;;  %s2081_s1 = inlined_call_operand.vmem [shape: bf16[8,16], index: 1, kind: input, shape index: {}]   ;;  %s2082_s2 = inlined_call_operand.vmem [shape: bf16[8,128], index: 2, kind: input, shape index: {}]   ;;  %s2083_s3 = inlined_call_operand.vmem [shape: bf16[32,256], index: 3, kind: input, shape index: {}]   ;;  %s2084_s4 = inlined_call_operand.vmem [shape: f32[1,256], index: 4, kind: input, shape index: {}]   ;;  %s2085_s5 = inlined_call_operand.hbm [shape: bf16[256,256], index: 5, kind: input, shape index: {}]   ;;  %s2086_s6 = inlined_call_operand.vmem [shape: f32[1,256], index: 6, kind: input, shape index: {}]   ;;  %s2087_s7 = inlined_call_operand.hbm [shape: bf16[128,256], index: 7, kind: input, shape index: {}]   ;;  %s2088_s8 = inlined_call_operand.vmem [shape: f32[1,256], index: 8, kind: input, shape index: {}]   ;;  %s2089_s9 = inlined_call_operand.hbm [shape: bf16[512,256], index: 9, kind: input, shape index: {}]   ;;  %s2090_s10 = inlined_call_operand.vmem [shape: f32[1,256], index: 10, kind: input, shape index: {}]   ;;  %s2091_s11 = inlined_call_operand.hbm [shape: f32[2,8,128], index: 11, kind: output, shape index: {0}]   ;;  %s2092_s12 = inlined_call_operand.vmem [shape: s32[2,8,1], index: 12, kind: output, shape index: {1}]  }
   0x1   :  { %19 = vsyncpa [#allocation6], 0 }
   0x2   :  { %20 = vsyncpa [#allocation4], 0  ;;  %s50_s23 = sshll.u32 %s2087_s7, 4  ;;  %s1922_s24 = smov [#allocation5]   ;;  %s51_s23 = int_to_ptr.hbm [resolvable:$true] %s50_s23 }
   0x3   :  { %s52_s25 = sshll.u32 %s1922_s24, 4  ;;  %s35_s28 = sshll.u32 %s2085_s5, 4  ;;  %s53_s25 = int_to_ptr.vmem [resolvable:$true] %s52_s25  ;;  %s36_s28 = int_to_ptr.hbm [resolvable:$true] %s35_s28 }
   0x4   :  { %s1923_s29 = smov 128   ;;  %s1924_s30 = smov 8  }
   0x5   :  { %58 = dma.hbm_to_vmem [thread:$0]  %s51_s23, 2048, %s53_s25, [#allocation6], %s1923_s29, %s1923_s29, %s1924_s30  }
   0x6   :  { %s1925_s13 = smov [#allocation2]   ;;  %s65_s7 = sshll.u32 %s2089_s9, 4  ;;  %s66_s7 = int_to_ptr.hbm [resolvable:$true] %s65_s7 }
   0x7   :  { %s37_s14 = sshll.u32 %s1925_s13, 4  ;;  %s1926_s5 = smov [#allocation7]   ;;  %s38_s14 = int_to_ptr.vmem [resolvable:$true] %s37_s14 }
   0x8   :  { %43 = dma.hbm_to_vmem [thread:$0]  %s36_s28, 4096, %s38_s14, [#allocation3], %s1923_s29, %s1923_s29, %s1924_s30  }
   0x9   :  { %s67_s17 = sshll.u32 %s1926_s5, 4  ;;  %s68_s17 = int_to_ptr.vmem [resolvable:$true] %s67_s17 }
   0xa   :  { %73 = dma.hbm_to_vmem [thread:$0]  %s66_s7, 8192, %s68_s17, [#allocation6], %s1923_s29, %s1923_s29, %s1924_s30  }
   0xb   :  { %1916 = dma.done.wait [#allocation3], 4096  }
   0xc   :  { %1917 = vsyncadd [#allocation3], 4294963200 }
   0xd   :  { %1918 = dma.done.wait [#allocation6], 10240  }
   0xe   :  { %1919 = vsyncadd [#allocation6], 4294957056  ;;  %v1230_v0 = vld [vmem:[%s2083_s3 + $0x10] sm:$0xf]  ;;  %v1693_v1 = vld [vmem:[%s2083_s3 + $0x14] sm:$0xf0] }
   0xf   :  { %v1692_v2 = vld [vmem:[%s2083_s3 + $0x14] sm:$0xf]  ;;  %v1231_v3 = vor.u32 %v1693_v1, %v1230_v0  ;;  %v1232_v4 = vld [vmem:[%s2083_s3 + $0x18] sm:$0xf0]  ;;  %v1222_v5 = vld [vmem:[%s2083_s3] sm:$0xf] }
  0x10   :  { %v1691_v6 = vld [vmem:[%s2083_s3 + $0x4] sm:$0xf0]  ;;  %v1235_v7 = vor.u32 %v1692_v2, %v1232_v4  ;;  %v1690_v8 = vld [vmem:[%s2083_s3 + $0x4] sm:$0xf]  ;;  %v1224_v9 = vld [vmem:[%s2083_s3 + $0x8] sm:$0xf0] }
  0x11   :  { %vm126_vm0 = vcmask 261120   ;;  %136 = vmatpush.bf16.msra.mxu2 %v1231_v3  ;;  %v1223_v10 = vor.u32 %v1691_v6, %v1222_v5  ;;  %v1296_v11 = vld [vmem:[#allocation2 + $0x70] sm:$0xf]  ;;  %v1709_v12 = vld [vmem:[#allocation2 + $0x74] sm:$0xf0]  ;;  %v1227_v14 = vor.u32 %v1690_v8, %v1224_v9  ;;  %v1689_v15 = vld [vmem:[%s2080_s0] sm:$0xff] }
  0x12   :  { %v1360_v13 = vld [vmem:[#allocation2 + $0xf0] sm:$0xf]  ;;  %150 = vmatpush.bf16.msra.mxu3 %v1235_v7  ;;  %v1297_v16 = vor.u32 %v1709_v12, %v1296_v11  ;;  %v1725_v17 = vld [vmem:[#allocation2 + $0xf4] sm:$0xf0]  ;;  %v1708_v18 = vld [vmem:[#allocation2 + $0x74] sm:$0xf] }
  0x13   :  { %v1298_v19 = vld [vmem:[#allocation2 + $0x78] sm:$0xf0]  ;;  %v1361_v20 = vor.u32 %v1725_v17, %v1360_v13  ;;  %v1724_v22 = vld [vmem:[#allocation2 + $0xf4] sm:$0xf]  ;;  %v1288_v24 = vld [vmem:[#allocation2 + $0x60] sm:$0xf] }
  0x14   :  { %v1301_v21 = vor.u32 %v1708_v18, %v1298_v19  ;;  %v1362_v23 = vld [vmem:[#allocation2 + $0xf8] sm:$0xf0]  ;;  %v1707_v26 = vld [vmem:[#allocation2 + $0x64] sm:$0xf0]  ;;  %v1352_v27 = vld [vmem:[#allocation2 + $0xe0] sm:$0xf] }
  0x15   :  { %v1365_v25 = vor.u32 %v1724_v22, %v1362_v23  ;;  %v1723_v28 = vld [vmem:[#allocation2 + $0xe4] sm:$0xf0]  ;;  %137 = vmatpush.bf16.msra.mxu2 %v1223_v10  ;;  %v1706_v29 = vld [vmem:[#allocation2 + $0x64] sm:$0xf]  ;;  %v1290_v30 = vld [vmem:[#allocation2 + $0x68] sm:$0xf0]  ;;  %v1289_v32 = vor.u32 %v1707_v26, %v1288_v24 }
  0x16   :  { %390 = vmatpush.bf16.msra.mxu0 %v1301_v21  ;;  %v1722_v31 = vld [vmem:[#allocation2 + $0xe4] sm:$0xf]  ;;  %151 = vmatpush.bf16.msra.mxu3 %v1227_v14  ;;  %v1293_v33 = vor.u32 %v1706_v29, %v1290_v30  ;;  %v1354_v34 = vld [vmem:[#allocation2 + $0xe8] sm:$0xf0]  ;;  %v1280_v35 = vld [vmem:[#allocation2 + $0x50] sm:$0xf]  ;;  %v1353_v37 = vor.u32 %v1723_v28, %v1352_v27 }
  0x17   :  { %v1705_v36 = vld [vmem:[#allocation2 + $0x54] sm:$0xf0]  ;;  %404 = vmatpush.bf16.msra.mxu1 %v1365_v25  ;;  %v1357_v38 = vor.u32 %v1722_v31, %v1354_v34  ;;  %v1344_v39 = vld [vmem:[#allocation2 + $0xd0] sm:$0xf]  ;;  %v1704_v41 = vld [vmem:[#allocation2 + $0x54] sm:$0xf] }
  0x18   :  { %v1721_v40 = vld [vmem:[#allocation2 + $0xd4] sm:$0xf0]  ;;  %1236 = vmatmul.msk.bf16.vlgmr.msra.gmra.mxu2 %vm126_vm0, %v1689_v15  ;;  %v1282_v42 = vld [vmem:[#allocation2 + $0x58] sm:$0xf0]  ;;  %v1720_v43 = vld [vmem:[#allocation2 + $0xd4] sm:$0xf]  ;;  %v1281_v46 = vor.u32 %v1705_v36, %v1280_v35 }
  0x19   :  { %362 = vmatpush.bf16.msrb.mxu2 %v1297_v16  ;;  %v1346_v44 = vld [vmem:[#allocation2 + $0xd8] sm:$0xf0]  ;;  %1237 = vmatmul.msk.bf16.vlgmr.msra.gmra.mxu3 %vm126_vm0, %v1689_v15  ;;  %v1285_v45 = vor.u32 %v1704_v41, %v1282_v42  ;;  %v1702_v47 = vld [vmem:[#allocation2 + $0x44] sm:$0xf]  ;;  %v1274_v48 = vld [vmem:[#allocation2 + $0x48] sm:$0xf0]  ;;  %v1345_v49 = vor.u32 %v1721_v40, %v1344_v39 }
  0x1a   :  { %376 = vmatpush.bf16.msrb.mxu3 %v1361_v20  ;;  %391 = vmatpush.bf16.msra.mxu0 %v1293_v33  ;;  %v1349_v50 = vor.u32 %v1720_v43, %v1346_v44  ;;  %v1272_v51 = vld [vmem:[#allocation2 + $0x40] sm:$0xf]  ;;  %v1703_v52 = vld [vmem:[#allocation2 + $0x44] sm:$0xf0]  ;;  %v1718_v55 = vld [vmem:[#allocation2 + $0xc4] sm:$0xf]  ;;  %v1277_v57 = vor.u32 %v1702_v47, %v1274_v48 }
  0x1b   :  { %405 = vmatpush.bf16.msra.mxu1 %v1357_v38  ;;  %v1336_v53 = vld [vmem:[#allocation2 + $0xc0] sm:$0xf]  ;;  %v1719_v54 = vld [vmem:[#allocation2 + $0xc4] sm:$0xf0]  ;;  %v1338_v56 = vld [vmem:[#allocation2 + $0xc8] sm:$0xf0]  ;;  %v1273_v58 = vor.u32 %v1703_v52, %v1272_v51 }
  0x1c   :  { %v1337_v59 = vor.u32 %v1719_v54, %v1336_v53  ;;  %v1341_v60 = vor.u32 %v1718_v55, %v1338_v56  ;;  %v1264_v61 = vld [vmem:[#allocation2 + $0x30] sm:$0xf]  ;;  %v1701_v62 = vld [vmem:[#allocation2 + $0x34] sm:$0xf0]  ;;  %v1700_v2 = vld [vmem:[#allocation2 + $0x34] sm:$0xf] }
  0x1d   :  { %363 = vmatpush.bf16.msrb.mxu2 %v1289_v32  ;;  %v1328_v63 = vld [vmem:[#allocation2 + $0xb0] sm:$0xf]  ;;  %v1265_v0 = vor.u32 %v1701_v62, %v1264_v61  ;;  %v1717_v1 = vld [vmem:[#allocation2 + $0xb4] sm:$0xf0]  ;;  %v1266_v3 = vld [vmem:[#allocation2 + $0x38] sm:$0xf0] }
  0x1e   :  { %377 = vmatpush.bf16.msrb.mxu3 %v1353_v37  ;;  %392 = vmatpush.bf16.msra.mxu0 %v1285_v45  ;;  %v1329_v4 = vor.u32 %v1717_v1, %v1328_v63  ;;  %v1269_v5 = vor.u32 %v1700_v2, %v1266_v3  ;;  %v1716_v6 = vld [vmem:[#allocation2 + $0xb4] sm:$0xf]  ;;  %v1330_v7 = vld [vmem:[#allocation2 + $0xb8] sm:$0xf0]  ;;  %v1256_v9 = vld [vmem:[#allocation2 + $0x20] sm:$0xf] }
  0x1f   :  { %406 = vmatpush.bf16.msra.mxu1 %v1349_v50  ;;  %v1333_v8 = vor.u32 %v1716_v6, %v1330_v7  ;;  %v1699_v10 = vld [vmem:[#allocation2 + $0x24] sm:$0xf0]  ;;  %v1320_v12 = vld [vmem:[#allocation2 + $0xa0] sm:$0xf]  ;;  %v1698_v14 = vld [vmem:[#allocation2 + $0x24] sm:$0xf] }
  0x20   :  { %v1257_v11 = vor.u32 %v1699_v10, %v1256_v9  ;;  %v1715_v13 = vld [vmem:[#allocation2 + $0xa4] sm:$0xf0]  ;;  %v1258_v16 = vld [vmem:[#allocation2 + $0x28] sm:$0xf0]  ;;  %v1714_v17 = vld [vmem:[#allocation2 + $0xa4] sm:$0xf] }
  0x21   :  { %364 = vmatpush.bf16.msrb.mxu2 %v1281_v46  ;;  %v1321_v15 = vor.u32 %v1715_v13, %v1320_v12  ;;  %v1322_v18 = vld [vmem:[#allocation2 + $0xa8] sm:$0xf0]  ;;  %v1261_v19 = vor.u32 %v1698_v14, %v1258_v16  ;;  %v1248_v21 = vld [vmem:[#allocation2 + $0x10] sm:$0xf]  ;;  %v1697_v22 = vld [vmem:[#allocation2 + $0x14] sm:$0xf0] }
  0x22   :  { %378 = vmatpush.bf16.msrb.mxu3 %v1345_v49  ;;  %393 = vmatpush.bf16.msra.mxu0 %v1277_v57  ;;  %v1325_v20 = vor.u32 %v1714_v17, %v1322_v18  ;;  %v1312_v23 = vld [vmem:[#allocation2 + $0x90] sm:$0xf]  ;;  %v1249_v24 = vor.u32 %v1697_v22, %v1248_v21  ;;  %v1713_v25 = vld [vmem:[#allocation2 + $0x94] sm:$0xf0]  ;;  %v1696_v26 = vld [vmem:[#allocation2 + $0x14] sm:$0xf] }
  0x23   :  { %407 = vmatpush.bf16.msra.mxu1 %v1341_v60  ;;  %v1250_v27 = vld [vmem:[#allocation2 + $0x18] sm:$0xf0]  ;;  %v1313_v28 = vor.u32 %v1713_v25, %v1312_v23  ;;  %v1712_v30 = vld [vmem:[#allocation2 + $0x94] sm:$0xf]  ;;  %v1240_v33 = vld [vmem:[#allocation2] sm:$0xf] }
  0x24   :  { %v1253_v29 = vor.u32 %v1696_v26, %v1250_v27  ;;  %v1314_v31 = vld [vmem:[#allocation2 + $0x98] sm:$0xf0]  ;;  %v1695_v34 = vld [vmem:[#allocation2 + $0x4] sm:$0xf0]  ;;  %v1304_v35 = vld [vmem:[#allocation2 + $0x80] sm:$0xf] }
  0x25   :  { %365 = vmatpush.bf16.msrb.mxu2 %v1273_v58  ;;  %v1317_v32 = vor.u32 %v1712_v30, %v1314_v31  ;;  %v1241_v36 = vor.u32 %v1695_v34, %v1240_v33  ;;  %v1711_v37 = vld [vmem:[#allocation2 + $0x84] sm:$0xf0]  ;;  %v1694_v38 = vld [vmem:[#allocation2 + $0x4] sm:$0xf]  ;;  %v1242_v39 = vld [vmem:[#allocation2 + $0x8] sm:$0xf0] }
  0x26   :  { %379 = vmatpush.bf16.msrb.mxu3 %v1337_v59  ;;  %394 = vmatpush.bf16.msra.mxu0 %v1269_v5  ;;  %v1305_v40 = vor.u32 %v1711_v37, %v1304_v35  ;;  %v1245_v41 = vor.u32 %v1694_v38, %v1242_v39  ;;  %v1710_v42 = vld [vmem:[#allocation2 + $0x84] sm:$0xf]  ;;  %v1306_v43 = vld [vmem:[#allocation2 + $0x88] sm:$0xf0]  ;;  %v1426_v45 = vld [vmem:[#allocation5 + $0x70] sm:$0xf] }
  0x27   :  { %408 = vmatpush.bf16.msra.mxu1 %v1333_v8  ;;  %v1309_v44 = vor.u32 %v1710_v42, %v1306_v43  ;;  %v1741_v46 = vld [vmem:[#allocation5 + $0x74] sm:$0xf0]  ;;  %v1740_v47 = vld [vmem:[#allocation5 + $0x74] sm:$0xf]  ;;  %v1428_v49 = vld [vmem:[#allocation5 + $0x78] sm:$0xf0] }
  0x28   :  { %v1427_v48 = vor.u32 %v1741_v46, %v1426_v45  ;;  %v1431_v50 = vor.u32 %v1740_v47, %v1428_v49  ;;  %v95_v51 = vld [vmem:[%s2084_s4] sm:$0x3]  ;;  %v1739_v5 = vld [vmem:[#allocation5 + $0x64] sm:$0xf0]  ;;  %v1738_v7 = vld [vmem:[#allocation5 + $0x64] sm:$0xf] }
  0x29   :  { %366 = vmatpush.bf16.msrb.mxu2 %v1265_v0  ;;  %v97_v54 = vperm.slane %v95_v51, 0  ;;  %v98_v55 = vperm.slane %v95_v51, 1  ;;  %v1420_v8 = vld [vmem:[#allocation5 + $0x68] sm:$0xf0]  ;;  %v1410_v10 = vld [vmem:[#allocation5 + $0x50] sm:$0xf] }
  0x2a   :  { %380 = vmatpush.bf16.msrb.mxu3 %v1329_v4  ;;  %395 = vmatpush.bf16.msra.mxu0 %v1261_v19  ;;  %v1418_v4 = vld [vmem:[#allocation5 + $0x60] sm:$0xf]  ;;  %v1423_v9 = vor.u32 %v1738_v7, %v1420_v8  ;;  %v1736_v13 = vld [vmem:[#allocation5 + $0x54] sm:$0xf]  ;;  %v1412_v14 = vld [vmem:[#allocation5 + $0x58] sm:$0xf0] }
  0x2b   :  { %409 = vmatpush.bf16.msra.mxu1 %v1325_v20  ;;  %v1419_v6 = vor.u32 %v1739_v5, %v1418_v4  ;;  %v1402_v16 = vld [vmem:[#allocation5 + $0x40] sm:$0xf]  ;;  %v1735_v17 = vld [vmem:[#allocation5 + $0x44] sm:$0xf0]  ;;  %v1734_v19 = vld [vmem:[#allocation5 + $0x44] sm:$0xf] }
  0x2c   :  { %v1403_v18 = vor.u32 %v1735_v17, %v1402_v16  ;;  %v1404_v20 = vld [vmem:[#allocation5 + $0x48] sm:$0xf0]  ;;  %v1394_v22 = vld [vmem:[#allocation5 + $0x30] sm:$0xf]  ;;  %v1733_v23 = vld [vmem:[#allocation5 + $0x34] sm:$0xf0] }
  0x2d   :  { %367 = vmatpush.bf16.msrb.mxu2 %v1257_v11  ;;  %v1737_v11 = vld [vmem:[#allocation5 + $0x54] sm:$0xf0]  ;;  %v1407_v21 = vor.u32 %v1734_v19, %v1404_v20  ;;  %v1732_v25 = vld [vmem:[#allocation5 + $0x34] sm:$0xf]  ;;  %v1396_v26 = vld [vmem:[#allocation5 + $0x38] sm:$0xf0] }
  0x2e   :  { %381 = vmatpush.bf16.msrb.mxu3 %v1321_v15  ;;  %396 = vmatpush.bf16.msra.mxu0 %v1253_v29  ;;  %v1411_v12 = vor.u32 %v1737_v11, %v1410_v10  ;;  %v1415_v15 = vor.u32 %v1736_v13, %v1412_v14  ;;  %v1399_v27 = vor.u32 %v1732_v25, %v1396_v26  ;;  %v1731_v29 = vld [vmem:[#allocation5 + $0x24] sm:$0xf0]  ;;  %v1730_v31 = vld [vmem:[#allocation5 + $0x24] sm:$0xf]  ;;  %v1378_v34 = vld [vmem:[#allocation5 + $0x10] sm:$0xf] }
  0x2f   :  { %410 = vmatpush.bf16.msra.mxu1 %v1317_v32  ;;  %v1388_v32 = vld [vmem:[#allocation5 + $0x28] sm:$0xf0]  ;;  %v1729_v35 = vld [vmem:[#allocation5 + $0x14] sm:$0xf0]  ;;  %v1728_v37 = vld [vmem:[#allocation5 + $0x14] sm:$0xf] }
  0x30   :  { %v1391_v33 = vor.u32 %v1730_v31, %v1388_v32  ;;  %v1380_v38 = vld [vmem:[#allocation5 + $0x18] sm:$0xf0]  ;;  %v1726_v43 = vld [vmem:[#allocation5 + $0x4] sm:$0xf]  ;;  %v451_v46 = vld [vmem:[%s2082_s2] sm:$0xf] }
  0x31   :  { %368 = vmatpush.bf16.msrb.mxu2 %v1249_v24  ;;  %v1395_v24 = vor.u32 %v1733_v23, %v1394_v22  ;;  %v1383_v39 = vor.u32 %v1728_v37, %v1380_v38  ;;  %v1618_v47 = vld [vmem:[#allocation7 + $0x170] sm:$0xf]  ;;  %v1805_v51 = vld [vmem:[#allocation7 + $0x1f4] sm:$0xf0]  ;;  %v1783_v4 = vld [vmem:[#allocation7 + $0x144] sm:$0xf0] }
  0x32   :  { %382 = vmatpush.bf16.msrb.mxu3 %v1313_v28  ;;  %397 = vmatpush.bf16.msra.mxu0 %v1245_v41  ;;  %v1386_v28 = vld [vmem:[#allocation5 + $0x20] sm:$0xf]  ;;  %v1727_v41 = vld [vmem:[#allocation5 + $0x4] sm:$0xf0]  ;;  %v1586_v10 = vld [vmem:[#allocation7 + $0x130] sm:$0xf] }
  0x33   :  { %411 = vmatpush.bf16.msra.mxu1 %v1309_v44  ;;  %v1387_v30 = vor.u32 %v1731_v29, %v1386_v28  ;;  %v1372_v44 = vld [vmem:[#allocation5 + $0x8] sm:$0xf0]  ;;  %v1658_v7 = vld [vmem:[#allocation7 + $0x1c0] sm:$0xf]  ;;  %v1799_v8 = vld [vmem:[#allocation7 + $0x1c4] sm:$0xf0] }
  0x34   :  { %v1375_v45 = vor.u32 %v1726_v43, %v1372_v44  ;;  %v1781_v11 = vld [vmem:[#allocation7 + $0x134] sm:$0xf0]  ;;  %v1659_v13 = vor.u32 %v1799_v8, %v1658_v7  ;;  %v1650_v16 = vld [vmem:[#allocation7 + $0x1b0] sm:$0xf]  ;;  %v1779_v25 = vld [vmem:[#allocation7 + $0x124] sm:$0xf0] }
  0x35   :  { %369 = vmatpush.bf16.msrb.mxu2 %v1241_v36  ;;  %v1379_v36 = vor.u32 %v1729_v35, %v1378_v34  ;;  %v1797_v17 = vld [vmem:[#allocation7 + $0x1b4] sm:$0xf0]  ;;  %v1554_v20 = vld [vmem:[#allocation7 + $0xf0] sm:$0xf]  ;;  %v1795_v31 = vld [vmem:[#allocation7 + $0x1a4] sm:$0xf0] }
  0x36   :  { %383 = vmatpush.bf16.msrb.mxu3 %v1305_v40  ;;  %554 = vmatpush.bf16.msrb.mxu0 %v1427_v48  ;;  %v1370_v40 = vld [vmem:[#allocation5] sm:$0xf]  ;;  %v1789_v48 = vld [vmem:[#allocation7 + $0x174] sm:$0xf0]  ;;  %v1771_v37 = vld [vmem:[#allocation7 + $0xe4] sm:$0xf0] }
  0x37   :  { %567 = vmatpush.bf16.msrb.mxu1 %v1431_v50  ;;  %v1371_v42 = vor.u32 %v1727_v41, %v1370_v40  ;;  %v1619_v49 = vor.u32 %v1789_v48, %v1618_v47  ;;  %v1682_v50 = vld [vmem:[#allocation7 + $0x1f0] sm:$0xf]  ;;  %v1773_v23 = vld [vmem:[#allocation7 + $0xf4] sm:$0xf0]  ;;  %v418_v41 = vld [vmem:[%s2081_s1] sm:$0xf] }
  0x38   :  { %v1555_v32 = vor.u32 %v1773_v23, %v1554_v20  ;;  %v1570_v38 = vld [vmem:[#allocation7 + $0x110] sm:$0xf]  ;;  %vm421_vm1 = vcmask 130048   ;;  %v1793_v47 = vld [vmem:[#allocation7 + $0x194] sm:$0xf0]  ;;  %s1198_s24 = sshll.u32 %s2091_s11, 4  ;;  %s1199_s24 = int_to_ptr.hbm [resolvable:$true] %s1198_s24 }
  0x39   :  { %v1684_v7 = vld [vmem:[#allocation7 + $0x1f8] sm:$0xf0]  ;;  %v1676_v20 = vld [vmem:[#allocation7 + $0x1e8] sm:$0xf0]  ;;  %v1466_v23 = vld [vmem:[#allocation7 + $0x40] sm:$0xf] }
  0x3a   :  { %555 = vmatpush.bf16.msrb.mxu0 %v1419_v6  ;;  %vm1148_vm0 = vcmask 7168  }
  0x3b   :  { %568 = vmatpush.bf16.msrb.mxu1 %v1423_v9 }
  0x3e   :  { %556 = vmatpush.bf16.msrb.mxu0 %v1411_v12 }
  0x3f   :  { %569 = vmatpush.bf16.msrb.mxu1 %v1415_v15 }
  0x42   :  { %557 = vmatpush.bf16.msrb.mxu0 %v1403_v18 }
  0x43   :  { %570 = vmatpush.bf16.msrb.mxu1 %v1407_v21  ;;  %v1587_v21 = vor.u32 %v1781_v11, %v1586_v10  ;;  %v1753_v11 = vld [vmem:[#allocation7 + $0x54] sm:$0xf0] }
  0x46   :  { %558 = vmatpush.bf16.msrb.mxu0 %v1395_v24  ;;  %v1578_v24 = vld [vmem:[#allocation7 + $0x120] sm:$0xf] }
  0x47   :  { %571 = vmatpush.bf16.msrb.mxu1 %v1399_v27  ;;  %v1651_v27 = vor.u32 %v1797_v17, %v1650_v16  ;;  %v1579_v34 = vor.u32 %v1779_v25, %v1578_v24  ;;  %v1522_v16 = vld [vmem:[#allocation7 + $0xb0] sm:$0xf]  ;;  %v1751_v24 = vld [vmem:[#allocation7 + $0x44] sm:$0xf0] }
  0x4a   :  { %559 = vmatpush.bf16.msrb.mxu0 %v1387_v30  ;;  %v1642_v30 = vld [vmem:[#allocation7 + $0x1a0] sm:$0xf] }
  0x4b   :  { %572 = vmatpush.bf16.msrb.mxu1 %v1391_v33  ;;  %v1546_v33 = vld [vmem:[#allocation7 + $0xe0] sm:$0xf]  ;;  %v1643_v43 = vor.u32 %v1795_v31, %v1642_v30  ;;  %v1458_v30 = vld [vmem:[#allocation7 + $0x30] sm:$0xf]  ;;  %v1749_v31 = vld [vmem:[#allocation7 + $0x34] sm:$0xf0] }
  0x4e   :  { %560 = vmatpush.bf16.msrb.mxu0 %v1379_v36 }
  0x4f   :  { %573 = vmatpush.bf16.msrb.mxu1 %v1383_v39  ;;  %v1777_v39 = vld [vmem:[#allocation7 + $0x114] sm:$0xf0] }
  0x52   :  { %561 = vmatpush.bf16.msrb.mxu0 %v1371_v42  ;;  %v1490_v42 = vld [vmem:[#allocation7 + $0x70] sm:$0xf] }
  0x53   :  { %574 = vmatpush.bf16.msrb.mxu1 %v1375_v45  ;;  %v1757_v45 = vld [vmem:[#allocation7 + $0x74] sm:$0xf0] }
  0x9b   :  { %v139_v52 = vpop.f32.mrf.mxu2 }
  0x9c   :  { %v153_v53 = vpop.f32.mrf.mxu3  ;;  %v140_v56 = vadd.f32 %v139_v52, %v97_v54  ;;  %v1683_v52 = vor.u32 %v1805_v51, %v1682_v50  ;;  %v1571_v50 = vor.u32 %v1777_v39, %v1570_v38  ;;  %v1498_v39 = vld [vmem:[#allocation7 + $0x80] sm:$0xf] }
  0x9d   :  { %v154_v57 = vadd.f32 %v153_v53, %v98_v55  ;;  %v1610_v53 = vld [vmem:[#allocation7 + $0x160] sm:$0xf] }
  0x9e   :  { %v158_v62 = vmax.f32 %v140_v56, 0.0  ;;  %v1674_v56 = vld [vmem:[#allocation7 + $0x1e0] sm:$0xf] }
  0x9f   :  { %v159_v0 = vmax.f32 %v154_v57, 0.0  ;;  %v1803_v57 = vld [vmem:[#allocation7 + $0x1e4] sm:$0xf0] }
  0xa3   :  { %v141_v58 = vpop.f32.mrf.mxu2 }
  0xa4   :  { %v142_v59 = vadd.f32 %v141_v58, %v97_v54  ;;  %v155_v60 = vpop.f32.mrf.mxu3  ;;  %v1787_v54 = vld [vmem:[#allocation7 + $0x164] sm:$0xf0]  ;;  %v1675_v58 = vor.u32 %v1803_v57, %v1674_v56  ;;  %v1482_v56 = vld [vmem:[#allocation7 + $0x60] sm:$0xf] }
  0xa5   :  { %v156_v61 = vadd.f32 %v155_v60, %v98_v55  ;;  %v1611_v55 = vor.u32 %v1787_v54, %v1610_v53  ;;  %v1785_v60 = vld [vmem:[#allocation7 + $0x154] sm:$0xf0]  ;;  %v1538_v53 = vld [vmem:[#allocation7 + $0xd0] sm:$0xf] }
  0xa6   :  { %v160_v63 = vmax.f32 %v142_v59, 0.0  ;;  %v1602_v59 = vld [vmem:[#allocation7 + $0x150] sm:$0xf]  ;;  %v1769_v54 = vld [vmem:[#allocation7 + $0xd4] sm:$0xf0] }
  0xa7   :  { %v161_v1 = vmax.f32 %v156_v61, 0.0  ;;  %v196_v61 = vld [vmem:[%s2086_s6] sm:$0x3] }
  0xa8   :  { %v162_v2 = vpack.c.bf16 %v160_v63, %v158_v62  ;;  %v1603_v63 = vor.u32 %v1785_v60, %v1602_v59  ;;  %v199_v6 = vperm.slane %v196_v61, 1  ;;  %v198_v18 = vperm.slane %v196_v61, 0  ;;  %v1775_v59 = vld [vmem:[#allocation7 + $0x104] sm:$0xf0] }
  0xa9   :  { %v163_v3 = vpack.c.bf16 %v161_v1, %v159_v0  ;;  %v1666_v0 = vld [vmem:[#allocation7 + $0x1d0] sm:$0xf]  ;;  %v1801_v1 = vld [vmem:[#allocation7 + $0x1d4] sm:$0xf0]  ;;  %v1755_v61 = vld [vmem:[#allocation7 + $0x64] sm:$0xf0] }
  0xaa   :  { %370 = vmatmul.bf16.vlgmr.msrb.gmra.mxu2 %v162_v2  ;;  %398 = vmatmul.bf16.vlgmr.msra.gmra.mxu0 %v162_v2  ;;  %v1667_v5 = vor.u32 %v1801_v1, %v1666_v0  ;;  %v1539_v0 = vor.u32 %v1769_v54, %v1538_v53  ;;  %v1530_v1 = vld [vmem:[#allocation7 + $0xc0] sm:$0xf]  ;;  %v1483_v8 = vor.u32 %v1755_v61, %v1482_v56  ;;  %v1756_v53 = vld [vmem:[#allocation7 + $0x74] sm:$0xf]  ;;  %v1492_v54 = vld [vmem:[#allocation7 + $0x78] sm:$0xf0] }
  0xab   :  { %384 = vmatmul.bf16.vlgmr.msrb.gmra.mxu3 %v163_v3  ;;  %412 = vmatmul.bf16.vlgmr.msra.gmra.mxu1 %v163_v3  ;;  %v1594_v3 = vld [vmem:[#allocation7 + $0x140] sm:$0xf]  ;;  %v1484_v61 = vld [vmem:[#allocation7 + $0x68] sm:$0xf0] }
  0xac   :  { %1000 = vmatpush.bf16.msra.mxu0 %v1619_v49  ;;  %1013 = vmatpush.bf16.msra.mxu1 %v1683_v52  ;;  %v1595_v9 = vor.u32 %v1783_v4, %v1594_v3  ;;  %v1547_v49 = vor.u32 %v1771_v37, %v1546_v33  ;;  %v1791_v3 = vld [vmem:[#allocation7 + $0x184] sm:$0xf0]  ;;  %v1506_v33 = vld [vmem:[#allocation7 + $0x90] sm:$0xf] }
  0xad   :  { %v1767_v4 = vld [vmem:[#allocation7 + $0xc4] sm:$0xf0] }
  0xae   :  { %v1747_v37 = vld [vmem:[#allocation7 + $0x24] sm:$0xf0] }
  0xb0   :  { %1001 = vmatpush.bf16.msra.mxu0 %v1611_v55  ;;  %1014 = vmatpush.bf16.msra.mxu1 %v1675_v58  ;;  %v1491_v55 = vor.u32 %v1757_v45, %v1490_v42  ;;  %v1562_v58 = vld [vmem:[#allocation7 + $0x100] sm:$0xf]  ;;  %v1772_v42 = vld [vmem:[#allocation7 + $0xf4] sm:$0xf]  ;;  %v1745_v45 = vld [vmem:[#allocation7 + $0x14] sm:$0xf0] }
  0xb4   :  { %1002 = vmatpush.bf16.msra.mxu0 %v1603_v63  ;;  %1015 = vmatpush.bf16.msra.mxu1 %v1667_v5  ;;  %v1620_v63 = vld [vmem:[#allocation7 + $0x178] sm:$0xf0]  ;;  %v1563_v5 = vor.u32 %v1775_v59, %v1562_v58  ;;  %v1495_v59 = vor.u32 %v1756_v53, %v1492_v54  ;;  %v1516_v53 = vld [vmem:[#allocation7 + $0xa8] sm:$0xf0] }
  0xb5   :  { %v1540_v58 = vld [vmem:[#allocation7 + $0xd8] sm:$0xf0] }
  0xb8   :  { %1003 = vmatpush.bf16.msra.mxu0 %v1595_v9  ;;  %1016 = vmatpush.bf16.msra.mxu1 %v1659_v13  ;;  %v1474_v9 = vld [vmem:[#allocation7 + $0x50] sm:$0xf]  ;;  %v1786_v13 = vld [vmem:[#allocation7 + $0x164] sm:$0xf] }
  0xba   :  { %562 = vmatmul.bf16.vlgmr.msrb.gmra.mxu0 %v451_v46 }
  0xbb   :  { %575 = vmatmul.bf16.vlgmr.msrb.gmra.mxu1 %v451_v46  ;;  %v1634_v46 = vld [vmem:[#allocation7 + $0x190] sm:$0xf] }
  0xbc   :  { %1004 = vmatpush.bf16.msra.mxu0 %v1587_v21  ;;  %1017 = vmatpush.bf16.msra.mxu1 %v1651_v27  ;;  %v1635_v57 = vor.u32 %v1793_v47, %v1634_v46  ;;  %v1475_v21 = vor.u32 %v1753_v11, %v1474_v9  ;;  %v1514_v27 = vld [vmem:[#allocation7 + $0xa0] sm:$0xf]  ;;  %v1596_v9 = vld [vmem:[#allocation7 + $0x148] sm:$0xf0] }
  0xc0   :  { %1005 = vmatpush.bf16.msra.mxu0 %v1579_v34  ;;  %1018 = vmatpush.bf16.msra.mxu1 %v1643_v43  ;;  %v1761_v34 = vld [vmem:[#allocation7 + $0x94] sm:$0xf0]  ;;  %v1556_v43 = vld [vmem:[#allocation7 + $0xf8] sm:$0xf0] }
  0xc1   :  { %v1507_v38 = vor.u32 %v1761_v34, %v1506_v33  ;;  %v1559_v47 = vor.u32 %v1772_v42, %v1556_v43  ;;  %v1752_v33 = vld [vmem:[#allocation7 + $0x54] sm:$0xf]  ;;  %v1476_v34 = vld [vmem:[#allocation7 + $0x58] sm:$0xf0] }
  0xc2   :  { %v1776_v43 = vld [vmem:[#allocation7 + $0x114] sm:$0xf] }
  0xc4   :  { %1006 = vmatpush.bf16.msra.mxu0 %v1571_v50  ;;  %1019 = vmatpush.bf16.msra.mxu1 %v1635_v57  ;;  %v1548_v50 = vld [vmem:[#allocation7 + $0xe8] sm:$0xf0]  ;;  %v1768_v57 = vld [vmem:[#allocation7 + $0xd4] sm:$0xf] }
  0xc8   :  { %1007 = vmatpush.bf16.msra.mxu0 %v1563_v5  ;;  %v468_v5 = vld [vmem:[%s2088_s8] sm:$0x3] }
 0x127   :  { %v399_v62 = vpop.f32.mrf.mxu0 }
 0x128   :  { %v413_v2 = vpop.f32.mrf.mxu1  ;;  %v400_v14 = vadd.f32 %v399_v62, %v199_v6  ;;  %v1788_v62 = vld [vmem:[#allocation7 + $0x174] sm:$0xf] }
 0x129   :  { %v1623_v10 = vor.u32 %v1788_v62, %v1620_v63  ;;  %v1543_v62 = vor.u32 %v1768_v57, %v1540_v58  ;;  %v1564_v57 = vld [vmem:[#allocation7 + $0x108] sm:$0xf0]  ;;  %v1748_v58 = vld [vmem:[#allocation7 + $0x34] sm:$0xf] }
 0x12a   :  { %v414_v28 = vadd.f32 %v413_v2, %v400_v14  ;;  %v1626_v2 = vld [vmem:[#allocation7 + $0x180] sm:$0xf]  ;;  %v1612_v14 = vld [vmem:[#allocation7 + $0x168] sm:$0xf0] }
 0x12b   :  { %1052 = vmatpush.bf16.msrb.mxu0 %v1623_v10 }
 0x12d   :  { %v371_v12 = vpop.f32.mrf.mxu2 }
 0x12e   :  { %v385_v15 = vpop.f32.mrf.mxu3  ;;  %v372_v35 = vadd.f32 %v371_v12, %v198_v18  ;;  %v1627_v12 = vor.u32 %v1791_v3, %v1626_v2  ;;  %v1800_v3 = vld [vmem:[#allocation7 + $0x1d4] sm:$0xf] }
 0x12f   :  { %v401_v19 = vpop.f32.mrf.mxu0 }
 0x130   :  { %v402_v22 = vadd.f32 %v401_v19, %v199_v6  ;;  %v415_v26 = vpop.f32.mrf.mxu1  ;;  %v386_v51 = vadd.f32 %v385_v15, %v372_v35  ;;  %v1804_v6 = vld [vmem:[#allocation7 + $0x1f4] sm:$0xf]  ;;  %v1531_v15 = vor.u32 %v1767_v4, %v1530_v1  ;;  %v1802_v19 = vld [vmem:[#allocation7 + $0x1e4] sm:$0xf]  ;;  %1020 = vmatpush.bf16.msra.mxu1 %v1627_v12  ;;  %v1459_v35 = vor.u32 %v1749_v31, %v1458_v30  ;;  %v1604_v1 = vld [vmem:[#allocation7 + $0x158] sm:$0xf0] }
 0x131   :  { %v1687_v17 = vor.u32 %v1804_v6, %v1684_v7  ;;  %v1668_v4 = vld [vmem:[#allocation7 + $0x1d8] sm:$0xf0]  ;;  %v470_v7 = vperm.slane %v468_v5, 0  ;;  %v1580_v31 = vld [vmem:[#allocation7 + $0x128] sm:$0xf0] }
 0x132   :  { %v416_v29 = vadd.f32 %v415_v26, %v402_v22  ;;  %v1615_v22 = vor.u32 %v1786_v13, %v1612_v14  ;;  %v1679_v26 = vor.u32 %v1802_v19, %v1676_v20  ;;  %v1671_v6 = vor.u32 %v1800_v3, %v1668_v4  ;;  %v1798_v14 = vld [vmem:[#allocation7 + $0x1c4] sm:$0xf]  ;;  %v1780_v20 = vld [vmem:[#allocation7 + $0x134] sm:$0xf]  ;;  %v1452_v3 = vld [vmem:[#allocation7 + $0x28] sm:$0xf0] }
 0x133   :  { %v471_v13 = vperm.slane %v468_v5, 1  ;;  %v1758_v4 = vld [vmem:[#allocation7 + $0x84] sm:$0xf]  ;;  %v1500_v5 = vld [vmem:[#allocation7 + $0x88] sm:$0xf0] }
 0x134   :  { %v420_v36 = vpack.c.bf16 %v416_v29, %v414_v28  ;;  %1065 = vmatpush.bf16.msrb.mxu1 %v1687_v17  ;;  %v1763_v28 = vld [vmem:[#allocation7 + $0xa4] sm:$0xf0]  ;;  %v1467_v29 = vor.u32 %v1751_v24, %v1466_v23  ;;  %1053 = vmatpush.bf16.msrb.mxu0 %v1615_v22  ;;  %v1796_v24 = vld [vmem:[#allocation7 + $0x1b4] sm:$0xf] }
 0x135   :  { %v373_v40 = vpop.f32.mrf.mxu2 }
 0x136   :  { %v374_v44 = vadd.f32 %v373_v40, %v198_v18  ;;  %445 = vmatpush.bf16.msra.mxu3 %v420_v36  ;;  %v387_v48 = vpop.f32.mrf.mxu3  ;;  %v1765_v18 = vld [vmem:[#allocation7 + $0xb4] sm:$0xf0]  ;;  %v1450_v36 = vld [vmem:[#allocation7 + $0x20] sm:$0xf]  ;;  %v1759_v40 = vld [vmem:[#allocation7 + $0x84] sm:$0xf0] }
 0x137   :  { %v1523_v25 = vor.u32 %v1765_v18, %v1522_v16  ;;  %v1499_v46 = vor.u32 %v1759_v40, %v1498_v39  ;;  %v563_v10 = vpop.f32.mrf.mxu0  ;;  %v1764_v40 = vld [vmem:[#allocation7 + $0xb4] sm:$0xf] }
 0x138   :  { %v388_v52 = vadd.f32 %v387_v48, %v374_v44  ;;  %1066 = vmatpush.bf16.msrb.mxu1 %v1679_v26  ;;  %v1442_v44 = vld [vmem:[#allocation7 + $0x10] sm:$0xf]  ;;  %v564_v12 = vadd.f32 %v563_v10, %v470_v7  ;;  %v576_v16 = vpop.f32.mrf.mxu1  ;;  %v1628_v7 = vld [vmem:[#allocation7 + $0x188] sm:$0xf0] }
 0x139   :  { %1367 = vmatmul.msk.bf16.vlgmr.msra.gmra.mxu3 %vm421_vm1, %v418_v41  ;;  %v1443_v48 = vor.u32 %v1745_v45, %v1442_v44  ;;  %v577_v19 = vadd.f32 %v576_v16, %v471_v13  ;;  %v1572_v45 = vld [vmem:[#allocation7 + $0x118] sm:$0xf0]  ;;  %v1742_v13 = vld [vmem:[#allocation7 + $0x4] sm:$0xf] }
 0x13a   :  { %987 = vmatpush.bf16.msrb.mxu3 %v1555_v32  ;;  %v419_v60 = vpack.c.bf16 %v388_v52, %v386_v51  ;;  %v1515_v32 = vor.u32 %v1763_v28, %v1514_v27  ;;  %v1434_v51 = vld [vmem:[#allocation7] sm:$0xf]  ;;  %v1743_v52 = vld [vmem:[#allocation7 + $0x4] sm:$0xf0]  ;;  %v2057_v18 = vpack.c.bf16 %v564_v12, %v564_v12  ;;  %v1766_v27 = vld [vmem:[#allocation7 + $0xc4] sm:$0xf] }
 0x13b   :  { %v1435_v56 = vor.u32 %v1743_v52, %v1434_v51  ;;  %v2059_v23 = vpack.c.bf16 %v577_v19, %v577_v19  ;;  %v1532_v28 = vld [vmem:[#allocation7 + $0xc8] sm:$0xf0]  ;;  %v1636_v51 = vld [vmem:[#allocation7 + $0x198] sm:$0xf0]  ;;  %v1762_v52 = vld [vmem:[#allocation7 + $0xa4] sm:$0xf] }
 0x13c   :  { %432 = vmatpush.bf16.msra.mxu2 %v419_v60  ;;  %v1754_v60 = vld [vmem:[#allocation7 + $0x64] sm:$0xf]  ;;  %1067 = vmatpush.bf16.msrb.mxu1 %v1671_v6  ;;  %v1535_v30 = vor.u32 %v1766_v27, %v1532_v28 }
 0x13d   :  { %v1487_v63 = vor.u32 %v1754_v60, %v1484_v61  ;;  %1008 = vmatmul.bf16.vlgmr.msra.gmra.mxu0 %v2057_v18  ;;  %1021 = vmatmul.bf16.vlgmr.msra.gmra.mxu1 %v2059_v23  ;;  %v1790_v61 = vld [vmem:[#allocation7 + $0x184] sm:$0xf] }
 0x13e   :  { %988 = vmatpush.bf16.msrb.mxu3 %v1547_v49  ;;  %v1770_v49 = vld [vmem:[#allocation7 + $0xe4] sm:$0xf]  ;;  %v1631_v10 = vor.u32 %v1790_v61, %v1628_v7 }
 0x13f   :  { %1366 = vmatmul.msk.bf16.vlgmr.msra.gmra.mxu2 %vm421_vm1, %v418_v41  ;;  %v1451_v41 = vor.u32 %v1747_v37, %v1450_v36  ;;  %v1794_v36 = vld [vmem:[#allocation7 + $0x1a4] sm:$0xf]  ;;  %v1479_v37 = vor.u32 %v1752_v33, %v1476_v34  ;;  %v1078_v33 = vlaneseq }
 0x140   :  { %974 = vmatpush.bf16.msrb.mxu2 %v1491_v55  ;;  %v1551_v55 = vor.u32 %v1770_v49, %v1548_v50  ;;  %v578_v39 = vpop.f32.mrf.mxu1  ;;  %v1792_v49 = vld [vmem:[#allocation7 + $0x194] sm:$0xf] }
 0x141   :  { %v1639_v54 = vor.u32 %v1792_v49, %v1636_v51 }
 0x142   :  { %989 = vmatpush.bf16.msrb.mxu3 %v1539_v0  ;;  %v1784_v0 = vld [vmem:[#allocation7 + $0x154] sm:$0xf] }
 0x143   :  { %v1607_v2 = vor.u32 %v1784_v0, %v1604_v1  ;;  %v1508_v0 = vld [vmem:[#allocation7 + $0x98] sm:$0xf0]  ;;  %v1746_v1 = vld [vmem:[#allocation7 + $0x24] sm:$0xf] }
 0x144   :  { %975 = vmatpush.bf16.msrb.mxu2 %v1483_v8  ;;  %v1782_v8 = vld [vmem:[#allocation7 + $0x144] sm:$0xf]  ;;  %v1455_v6 = vor.u32 %v1746_v1, %v1452_v3 }
 0x145   :  { %1054 = vmatpush.bf16.msrb.mxu0 %v1607_v2  ;;  %v1599_v11 = vor.u32 %v1782_v8, %v1596_v9  ;;  %v1744_v8 = vld [vmem:[#allocation7 + $0x14] sm:$0xf]  ;;  %v1444_v9 = vld [vmem:[#allocation7 + $0x18] sm:$0xf0] }
 0x146   :  { %990 = vmatpush.bf16.msrb.mxu3 %v1531_v15  ;;  %v1660_v15 = vld [vmem:[#allocation7 + $0x1c8] sm:$0xf0]  ;;  %v1447_v12 = vor.u32 %v1744_v8, %v1444_v9 }
 0x147   :  { %v1663_v17 = vor.u32 %v1798_v14, %v1660_v15  ;;  %v1436_v14 = vld [vmem:[#allocation7 + $0x8] sm:$0xf0] }
 0x148   :  { %976 = vmatpush.bf16.msrb.mxu2 %v1475_v21  ;;  %v1588_v21 = vld [vmem:[#allocation7 + $0x138] sm:$0xf0]  ;;  %v1439_v15 = vor.u32 %v1742_v13, %v1436_v14 }
 0x149   :  { %1055 = vmatpush.bf16.msrb.mxu0 %v1599_v11  ;;  %1068 = vmatpush.bf16.msrb.mxu1 %v1663_v17  ;;  %v1591_v22 = vor.u32 %v1780_v20, %v1588_v21  ;;  %v1503_v11 = vor.u32 %v1758_v4, %v1500_v5 }
 0x14a   :  { %991 = vmatpush.bf16.msrb.mxu3 %v1523_v25  ;;  %v1652_v25 = vld [vmem:[#allocation7 + $0x1b8] sm:$0xf0] }
 0x14b   :  { %v1655_v26 = vor.u32 %v1796_v24, %v1652_v25 }
 0x14c   :  { %977 = vmatpush.bf16.msrb.mxu2 %v1467_v29  ;;  %v1778_v29 = vld [vmem:[#allocation7 + $0x124] sm:$0xf] }
 0x14d   :  { %1056 = vmatpush.bf16.msrb.mxu0 %v1591_v22  ;;  %1069 = vmatpush.bf16.msrb.mxu1 %v1655_v26 }
 0x14e   :  { %992 = vmatpush.bf16.msrb.mxu3 %v1515_v32  ;;  %v565_v32 = vpop.f32.mrf.mxu0 }
 0x150   :  { %978 = vmatpush.bf16.msrb.mxu2 %v1459_v35  ;;  %v1583_v35 = vor.u32 %v1778_v29, %v1580_v31  ;;  %v648_v31 = vld [vmem:[%s2090_s10] sm:$0x3]  ;;  %s1927_s10 = smov [#allocation8]  }
 0x151   :  { %v650_v32 = vperm.slane %v648_v31, 0  ;;  %s1196_s21 = sshll.u32 %s1927_s10, 4  ;;  %s1197_s21 = int_to_ptr.vmem [resolvable:$true] %s1196_s21 }
 0x152   :  { %993 = vmatpush.bf16.msrb.mxu3 %v1507_v38  ;;  %v1644_v38 = vld [vmem:[#allocation7 + $0x1a8] sm:$0xf0]  ;;  %1057 = vmatpush.bf16.msrb.mxu0 %v1583_v35 }
 0x153   :  { %v1647_v42 = vor.u32 %v1794_v36, %v1644_v38 }
 0x154   :  { %979 = vmatpush.bf16.msrb.mxu2 %v1451_v41  ;;  %v1524_v41 = vld [vmem:[#allocation7 + $0xb8] sm:$0xf0] }
 0x155   :  { %v1527_v44 = vor.u32 %v1764_v40, %v1524_v41  ;;  %1070 = vmatpush.bf16.msrb.mxu1 %v1647_v42 }
 0x156   :  { %994 = vmatpush.bf16.msrb.mxu3 %v1499_v46  ;;  %v1750_v46 = vld [vmem:[#allocation7 + $0x44] sm:$0xf] }
 0x158   :  { %980 = vmatpush.bf16.msrb.mxu2 %v1443_v48  ;;  %v1575_v48 = vor.u32 %v1776_v43, %v1572_v45 }
 0x159   :  { %1071 = vmatpush.bf16.msrb.mxu1 %v1639_v54 }
 0x15a   :  { %1039 = vmatpush.bf16.msra.mxu3 %v1559_v47  ;;  %v1468_v47 = vld [vmem:[#allocation7 + $0x48] sm:$0xf0]  ;;  %1058 = vmatpush.bf16.msrb.mxu0 %v1575_v48 }
 0x15b   :  { %v1471_v50 = vor.u32 %v1750_v46, %v1468_v47 }
 0x15c   :  { %981 = vmatpush.bf16.msrb.mxu2 %v1435_v56  ;;  %v1519_v56 = vor.u32 %v1762_v52, %v1516_v53 }
 0x15d   :  { %1072 = vmatpush.bf16.msrb.mxu1 %v1631_v10 }
 0x15e   :  { %1040 = vmatpush.bf16.msra.mxu3 %v1551_v55  ;;  %v1774_v55 = vld [vmem:[#allocation7 + $0x104] sm:$0xf] }
 0x15f   :  { %v1567_v60 = vor.u32 %v1774_v55, %v1564_v57 }
 0x160   :  { %1026 = vmatpush.bf16.msra.mxu2 %v1495_v59  ;;  %v1460_v59 = vld [vmem:[#allocation7 + $0x38] sm:$0xf0]  ;;  %1073 = vmatmul.bf16.vlgmr.msrb.gmra.mxu1 %v2059_v23 }
 0x161   :  { %1059 = vmatpush.bf16.msrb.mxu0 %v1567_v60 }
 0x162   :  { %1041 = vmatpush.bf16.msra.mxu3 %v1543_v62  ;;  %v1463_v62 = vor.u32 %v1748_v58, %v1460_v59 }
 0x164   :  { %1027 = vmatpush.bf16.msra.mxu2 %v1487_v63  ;;  %v1760_v63 = vld [vmem:[#allocation7 + $0x94] sm:$0xf]  ;;  %1060 = vmatmul.bf16.vlgmr.msrb.gmra.mxu0 %v2057_v18 }
 0x165   :  { %v1511_v2 = vor.u32 %v1760_v63, %v1508_v0 }
 0x166   :  { %1042 = vmatpush.bf16.msra.mxu3 %v1535_v30 }
 0x168   :  { %1028 = vmatpush.bf16.msra.mxu2 %v1479_v37  ;;  %v1079_v37 = vand.u32 127, %v1078_v33 }
 0x16a   :  { %1043 = vmatpush.bf16.msra.mxu3 %v1527_v44  ;;  %vm1105_vm2 = vcmp.lt.s32.totalorder %v1079_v37, 4  ;;  %v651_v44 = vperm.slane %v648_v31, 1  ;;  %v1080_v45 = vadd.s32 128, %v1079_v37 }
 0x16c   :  { %1029 = vmatpush.bf16.msra.mxu2 %v1471_v50  ;;  %v1092_v49 = vand.u32 127, %v1080_v45 }
 0x16e   :  { %1044 = vmatpush.bf16.msra.mxu3 %v1519_v56  ;;  %vm1106_vm3 = vcmp.lt.s32.totalorder %v1092_v49, 4 }
 0x170   :  { %1030 = vmatpush.bf16.msra.mxu2 %v1463_v62 }
 0x172   :  { %1045 = vmatpush.bf16.msra.mxu3 %v1511_v2 }
 0x174   :  { %1031 = vmatpush.bf16.msra.mxu2 %v1455_v6 }
 0x176   :  { %1046 = vmatpush.bf16.msra.mxu3 %v1503_v11 }
 0x178   :  { %1032 = vmatpush.bf16.msra.mxu2 %v1447_v12 }
 0x17c   :  { %1033 = vmatpush.bf16.msra.mxu2 %v1439_v15 }
 0x1ba   :  { %v1009_v18 = vpop.f32.mrf.mxu0  ;;  %v1022_v24 = vpop.f32.mrf.mxu1 }
 0x1bc   :  { %v447_v16 = vpop.f32.mrf.mxu3 }
 0x1bd   :  { %v581_v17 = vpack.c.bf16 %v447_v16, %v447_v16 }
 0x1bf   :  { %995 = vmatmul.bf16.vlgmr.msrb.gmra.mxu3 %v581_v17 }
 0x1c2   :  { %v434_v19 = vpop.f32.mrf.mxu2  ;;  %v1011_v25 = vpop.f32.mrf.mxu0 }
 0x1c3   :  { %v580_v20 = vpack.c.bf16 %v434_v19, %v434_v19  ;;  %v1024_v26 = vpop.f32.mrf.mxu1 }
 0x1c4   :  { %v449_v21 = vpop.f32.mrf.mxu3 }
 0x1c5   :  { %982 = vmatmul.bf16.vlgmr.msrb.gmra.mxu2 %v580_v20 }
 0x1ca   :  { %v436_v22 = vpop.f32.mrf.mxu2 }
 0x1cf   :  { %1047 = vmatmul.bf16.vlgmr.msra.gmra.mxu3 %v581_v17 }
 0x1d5   :  { %1034 = vmatmul.bf16.vlgmr.msra.gmra.mxu2 %v580_v20 }
 0x1dd   :  { %v1074_v27 = vpop.f32.mrf.mxu1 }
 0x1e1   :  { %v1061_v23 = vpop.f32.mrf.mxu0 }
 0x1e5   :  { %v1076_v29 = vpop.f32.mrf.mxu1 }
 0x1e9   :  { %v1063_v28 = vpop.f32.mrf.mxu0 }
 0x242   :  { %v996_v30 = vpop.f32.mrf.mxu3 }
 0x248   :  { %v983_v34 = vpop.f32.mrf.mxu2 }
 0x249   :  { %v984_v35 = vadd.f32 %v983_v34, %v650_v32 }
 0x24a   :  { %v998_v36 = vpop.f32.mrf.mxu3 }
 0x24b   :  { %v997_v38 = vadd.f32 %v996_v30, %v984_v35 }
 0x24d   :  { %v1010_v39 = vadd.f32 %v1009_v18, %v997_v38 }
 0x24f   :  { %v1023_v40 = vadd.f32 %v1022_v24, %v1010_v39 }
 0x250   :  { %v985_v41 = vpop.f32.mrf.mxu2 }
 0x251   :  { %v1107_v42 = vsel %vm1105_vm2, %v1023_v40, -1e+30 }
 0x252   :  { %v1048_v43 = vpop.f32.mrf.mxu3  ;;  %1109 = vmax.xlane.f32.xlu0 %v1107_v42 }
 0x258   :  { %v1035_v46 = vpop.f32.mrf.mxu2 }
 0x259   :  { %v1036_v47 = vadd.f32 %v1035_v46, %v651_v44 }
 0x25a   :  { %v1050_v48 = vpop.f32.mrf.mxu3 }
 0x25b   :  { %v1049_v50 = vadd.f32 %v1048_v43, %v1036_v47 }
 0x25d   :  { %v1062_v51 = vadd.f32 %v1061_v23, %v1049_v50 }
 0x25f   :  { %v1075_v52 = vadd.f32 %v1074_v27, %v1062_v51 }
 0x260   :  { %v1037_v53 = vpop.f32.mrf.mxu2 }
 0x261   :  { %v1108_v54 = vsel %vm1106_vm3, %v1075_v52, -1e+30 }
 0x262   :  { %1150 = vmax.xlane.f32.xlu0 %v1108_v54 }
 0x2c5   :  { %v1110_v55 = vpop.xlane.xlu0 %1109 }
 0x2c6   :  { %v1111_v56 = vsub.f32 %v1107_v42, %v1110_v55  ;;  %vm1132_vm4 = vcmp.ge.f32.partialorder %v1107_v42, %v1110_v55 }
 0x2c7   :  { %v1133_v57 = vsel %vm1132_vm4, %v1079_v37, 128 }
 0x2c8   :  { %v1112_v58 = vmul.f32 1.442695, %v1111_v56  ;;  %v1135_v59 = vshra.s32 %v1133_v57, 16  ;;  %v1134_v5 = vand.u32 65535, %v1133_v57 }
 0x2ca   :  { %1812 = vpow2.f32 %v1112_v58  ;;  %v1137_v60 = vcvt.s32.f32 %v1135_v59  ;;  %v1136_v7 = vcvt.s32.f32 %v1134_v5 }
 0x2cc   :  { %1138 = vmin.xlane.f32.xlu1 %v1137_v60 }
 0x2d0   :  { %v1813_v61 = vpop.eup %1812 }
 0x2d1   :  { %1114 = vadd.xlane.f32.xlu2 %v1813_v61 }
 0x2d5   :  { %v1151_v62 = vpop.xlane.xlu0 %1150 }
 0x2d6   :  { %v1152_v63 = vsub.f32 %v1108_v54, %v1151_v62  ;;  %vm1174_vm5 = vcmp.ge.f32.partialorder %v1108_v54, %v1151_v62 }
 0x2d7   :  { %v1175_v0 = vsel %vm1174_vm5, %v1079_v37, 128 }
 0x2d8   :  { %v1153_v1 = vmul.f32 1.442695, %v1152_v63  ;;  %v1177_v2 = vshra.s32 %v1175_v0, 16  ;;  %v1176_v11 = vand.u32 65535, %v1175_v0 }
 0x2da   :  { %1814 = vpow2.f32 %v1153_v1  ;;  %v1179_v3 = vcvt.s32.f32 %v1177_v2  ;;  %v1178_v15 = vcvt.s32.f32 %v1176_v11 }
 0x2dc   :  { %1180 = vmin.xlane.f32.xlu1 %v1179_v3 }
 0x2e0   :  { %v1815_v4 = vpop.eup %1814 }
 0x2e1   :  { %1155 = vadd.xlane.f32.xlu2 %v1815_v4 }
 0x33f   :  { %v1139_v6 = vpop.xlane.xlu1 %1138 }
 0x340   :  { %vm1140_vm6 = vcmp.eq.f32.partialorder %v1137_v60, %v1139_v6  ;;  %v1145_v37 = vcvt.f32.s32 %v1139_v6 }
 0x341   :  { %v1141_v8 = vsel %vm1140_vm6, %v1136_v7, inf }
 0x342   :  { %1142 = vmin.xlane.f32.xlu0 %v1141_v8  ;;  %v1146_v39 = vshll.u32 %v1145_v37, 16 }
 0x344   :  { %v1115_v9 = vpop.xlane.xlu2 %1114 }
 0x345   :  { %1816 = vrcp.f32 %v1115_v9  ;;  %v1127_v17 = vand.u32 2147483648, %v1115_v9  ;;  %v1125_v19 = vand.u32 2147483647, %v1115_v9  ;;  %vm1121_vm9 = vweird.f32 %v1115_v9 }
 0x347   :  { %v1128_v22 = vor.u32 1.1754944e-38, %v1127_v17  ;;  %vm1126_vm11 = vcmp.eq.f32.partialorder %v1125_v19, 8.507059e+37 }
 0x34b   :  { %v1817_v10 = vpop.eup %1816 }
 0x34c   :  { %v1117_v12 = vmul.f32 %v1817_v10, %v1115_v9  ;;  %vm1122_vm7 = vweird.f32 %v1817_v10 }
 0x34d   :  { %vm1123_vm10 = vmor %vm1121_vm9, %vm1122_vm7 }
 0x34e   :  { %v1118_v13 = vsub.f32 1.0, %v1117_v12 }
 0x34f   :  { %v1181_v14 = vpop.xlane.xlu1 %1180 }
 0x350   :  { %v1119_v16 = vmul.f32 %v1817_v10, %v1118_v13  ;;  %vm1182_vm8 = vcmp.eq.f32.partialorder %v1179_v3, %v1181_v14  ;;  %v1187_v42 = vcvt.f32.s32 %v1181_v14 }
 0x351   :  { %v1183_v20 = vsel %vm1182_vm8, %v1178_v15, inf }
 0x352   :  { %v1120_v21 = vadd.f32 %v1817_v10, %v1119_v16  ;;  %1184 = vmin.xlane.f32.xlu1 %v1183_v20  ;;  %v1188_v44 = vshll.u32 %v1187_v42, 16 }
 0x354   :  { %v1156_v18 = vpop.xlane.xlu2 %1155  ;;  %v1124_v24 = vsel %vm1123_vm10, %v1817_v10, %v1120_v21 }
 0x355   :  { %1818 = vrcp.f32 %v1156_v18  ;;  %v1129_v25 = vsel %vm1126_vm11, %v1128_v22, %v1124_v24  ;;  %v1168_v29 = vand.u32 2147483648, %v1156_v18  ;;  %v1166_v31 = vand.u32 2147483647, %v1156_v18 }
 0x356   :  { %v1130_v26 = vmul.f32 %v1813_v61, %v1129_v25  ;;  %vm1162_vm13 = vweird.f32 %v1156_v18 }
 0x357   :  { %v1169_v33 = vor.u32 1.1754944e-38, %v1168_v29  ;;  %vm1167_vm15 = vcmp.eq.f32.partialorder %v1166_v31, 8.507059e+37 }
 0x358   :  { %1131 = vst [vmem:[#allocation8] sm:$0xff] %v1130_v26 }
 0x35b   :  { %v1819_v23 = vpop.eup %1818 }
 0x35c   :  { %v1158_v27 = vmul.f32 %v1819_v23, %v1156_v18  ;;  %vm1163_vm12 = vweird.f32 %v1819_v23 }
 0x35d   :  { %vm1164_vm14 = vmor %vm1162_vm13, %vm1163_vm12 }
 0x35e   :  { %v1159_v28 = vsub.f32 1.0, %v1158_v27 }
 0x360   :  { %v1160_v30 = vmul.f32 %v1819_v23, %v1159_v28 }
 0x362   :  { %v1161_v32 = vadd.f32 %v1819_v23, %v1160_v30 }
 0x364   :  { %v1165_v34 = vsel %vm1164_vm14, %v1819_v23, %v1161_v32 }
 0x365   :  { %v1170_v35 = vsel %vm1167_vm15, %v1169_v33, %v1165_v34 }
 0x366   :  { %v1171_v36 = vmul.f32 %v1815_v4, %v1170_v35 }
 0x368   :  { %1173 = vst [vmem:[#allocation8 + $0x8] sm:$0xff] %v1171_v36 }
 0x369   :  { %1204 = dma.vmem_to_hbm [thread:$0]  %s1197_s21, 256, %s1199_s24, [#allocation4], %s1923_s29, %s1923_s29, %s1924_s30  }
 0x3b5   :  { %v1143_v38 = vpop.xlane.xlu0 %1142 }
 0x3b6   :  { %v1144_v40 = vcvt.f32.s32 %v1143_v38 }
 0x3b8   :  { %v1147_v41 = vadd.s32 %v1146_v39, %v1144_v40 }
 0x3ba   :  { %1149 = vst.msk [vmem:[%s2092_s12] sm:$0xff] %vm1148_vm0, %v1147_v41 }
 0x3c5   :  { %v1185_v43 = vpop.xlane.xlu1 %1184 }
 0x3c6   :  { %v1186_v45 = vcvt.f32.s32 %v1185_v43 }
 0x3c8   :  { %v1189_v46 = vadd.s32 %v1188_v44, %v1186_v45 }
 0x3ca   :  { %1688 = vst.msk [vmem:[%s2092_s12 + $0x8] sm:$0xff] %vm1148_vm0, %v1189_v46 }
 0x3cb   :  { %1920 = dma.done.wait [#allocation4], 256  }
 0x3cc   :  { %1921 = vsyncadd [#allocation4], 4294967040 }
 0x3cd   :  { %1213 = vsyncpa [#allocation3], 1 }
 0x3ce   :  { %1214 = vsyncpa [#allocation6], 1 }
 0x3cf   :  { %1215 = vsyncpa [#allocation4], 1 }

</bundles_post_ra>
